<compile_context>
chip_gen: v5e
topology: v5e:2x2
jax: 0.10.0
libtpu: 0.0.40
codegen_flags: <defaults>
</compile_context>

<pallas_src>
import jax
import jax.numpy as jnp
from jax.experimental import pallas as pl
from jax.experimental.pallas import tpu as pltpu


_LANE = 128
_SPLITS = 2                      # 2-way row split of stats reductions (v7x megacore)
_TM_CANDIDATES = (2048, 1024, 512, 256, 128, 64, 32, 16, 8)


def _round_up(x, m):
    return (x + m - 1) // m * m


def _vmem_limits():
    """Generation-aware scoped-VMEM request + tile-sizing budget."""
    cap = 128 * 1024 * 1024                      # v5e/v6e default
    try:
        info = pltpu.get_tpu_info()
        cap = int(getattr(info, "vmem_capacity_bytes", cap) or cap)
    except Exception:
        pass
    # ~45% of the physical VMEM (=> ~28 MiB on v7x's 64 MiB, ~57 MiB on 128 MiB parts)
    limit = min(max(int(cap * 0.45), 24 * 1024 * 1024), 64 * 1024 * 1024)
    budget = int(limit * 0.75)                   # headroom for Mosaic-internal scratch
    return limit, budget


def _pick_tn(c_pad):
    """Lane-dense output-channel tile: a 128-multiple that divides c_pad."""
    for tn in (512, 256, 128):
        if c_pad % tn == 0:
            return tn
    return _LANE


def _pick_tiles(m_rows, c_in, c_pad, tn, budget):
    """Row tiles for (a) matmul(+stats) passes and (b) weight-free passes.

    tm_mm divides tm_ew (both power-of-two); the cap keeps >= 4 total grid
    steps (>= 2 per TensorCore on v7x) so input/output DMA stays overlapped.
    Footprints count lane padding (round_up(C,128)) and the default 2x
    double-buffering of every block, including the grid-invariant weight.
    """
    c_in_l = _round_up(c_in, _LANE)                    # lane-padded VMEM row width
    per_row_ew = 4 * 5 * max(c_pad, c_in_l)            # 2x in + 2x out bufs + f32 tmp
    per_row_mm = 4 * (2 * c_in_l + 4 * tn)             # x dbl-buf + y dbl-buf + f32 tmps
    fixed_mm = 4 * (2 * _round_up(c_in, 8) * tn        # W^T block, double-buffered
                    + 6 * 8 * tn)                      # bias + stats accumulators
    cap = _round_up(pl.cdiv(m_rows, 4), 8)             # >= ~4 grid steps

    def pick(per_row, avail):
        for cand in _TM_CANDIDATES:
            if cand <= cap and cand * per_row <= avail:
                return cand
        return 8

    tm_ew = pick(per_row_ew, budget)
    tm_mm = pick(per_row_mm, max(budget - fixed_mm, 8 * per_row_mm))
    return min(tm_mm, tm_ew), tm_ew


def _compiler_params(semantics, vmem_limit):
    return pltpu.CompilerParams(dimension_semantics=semantics,
                                vmem_limit_bytes=vmem_limit)


# ----------------------------- kernels --------------------------------------

def _linear_kernel(x_ref, wt_ref, b_ref, o_ref):
    # y = x @ W^T + b   (wt_ref is a (c_in, tn) column slab of W^T)
    o_ref[...] = (
        jnp.dot(x_ref[...], wt_ref[...], preferred_element_type=jnp.float32)
        + b_ref[...]
    ).astype(o_ref.dtype)


def _linear_stats_kernel(x_ref, wt_ref, b_ref, o_ref, sum_ref, ssq_ref):
    # matmul + per-output-channel sum / sum-of-squares in one pass (post-BN
    # path).  No row masking: padded zero rows yield exactly the bias row and
    # are corrected once in the wrapper.
    @pl.when(pl.program_id(2) == 0)
    def _():
        sum_ref[...] = jnp.zeros_like(sum_ref)
        ssq_ref[...] = jnp.zeros_like(ssq_ref)

    y = (jnp.dot(x_ref[...], wt_ref[...], preferred_element_type=jnp.float32)
         + b_ref[...])
    o_ref[...] = y.astype(o_ref.dtype)
    sum_ref[0] += jnp.sum(y, axis=0, keepdims=True)
    ssq_ref[0] += jnp.sum(y * y, axis=0, keepdims=True)


def _stats_kernel(x_ref, sum_ref, ssq_ref):
    # per-channel sum / sum-of-squares over rows (per-split accumulators;
    # padded rows are zero so they contribute nothing).
    @pl.when(pl.program_id(1) == 0)
    def _():
        sum_ref[...] = jnp.zeros_like(sum_ref)
        ssq_ref[...] = jnp.zeros_like(ssq_ref)

    x = x_ref[...].astype(jnp.float32)
    sum_ref[0] += jnp.sum(x, axis=0, keepdims=True)
    ssq_ref[0] += jnp.sum(x * x, axis=0, keepdims=True)


def _bn_apply_kernel(y_ref, scale_ref, shift_ref, o_ref):
    o_ref[...] = (
        y_ref[...].astype(jnp.float32) * scale_ref[...] + shift_ref[...]
    ).astype(o_ref.dtype)


# ----------------------------- pallas wrappers -------------------------------

def _linear(x2d, wt, bias2d, tm, tn, vmem_limit):
    M, c_in = x2d.shape
    c_pad = wt.shape[1]
    return pl.pallas_call(
        _linear_kernel,
        out_shape=jax.ShapeDtypeStruct((M, c_pad), x2d.dtype),
        grid_spec=pltpu.PrefetchScalarGridSpec(
            num_scalar_prefetch=0,
            grid=(M // tm, c_pad // tn),
            in_specs=[
                pl.BlockSpec((tm, c_in), lambda i, j: (i, 0)),
                pl.BlockSpec((c_in, tn), lambda i, j: (0, j)),
                pl.BlockSpec((1, tn), lambda i, j: (0, j)),
            ],
            out_specs=pl.BlockSpec((tm, tn), lambda i, j: (i, j)),
        ),
        compiler_params=_compiler_params(("parallel", "parallel"), vmem_limit),
    )(x2d, wt, bias2d)


def _linear_stats(x2d, wt, bias2d, tm, tn, vmem_limit):
    M, c_in = x2d.shape
    c_pad = wt.shape[1]
    spc = M // (_SPLITS * tm)            # row-tile steps per split (>= 1 by construction)
    return pl.pallas_call(
        _linear_stats_kernel,
        out_shape=(
            jax.ShapeDtypeStruct((M, c_pad), x2d.dtype),
            jax.ShapeDtypeStruct((_SPLITS, 1, c_pad), jnp.float32),
            jax.ShapeDtypeStruct((_SPLITS, 1, c_pad), jnp.float32),
        ),
        grid_spec=pltpu.PrefetchScalarGridSpec(
            num_scalar_prefetch=0,
            grid=(_SPLITS, c_pad // tn, spc),
            in_specs=[
                pl.BlockSpec((tm, c_in), lambda c, j, i: (c * spc + i, 0)),
                pl.BlockSpec((c_in, tn), lambda c, j, i: (0, j)),
                pl.BlockSpec((1, tn), lambda c, j, i: (0, j)),
            ],
            out_specs=(
                pl.BlockSpec((tm, tn), lambda c, j, i: (c * spc + i, j)),
                pl.BlockSpec((1, 1, tn), lambda c, j, i: (c, 0, j)),
                pl.BlockSpec((1, 1, tn), lambda c, j, i: (c, 0, j)),
            ),
        ),
        compiler_params=_compiler_params(
            ("parallel", "parallel", "arbitrary"), vmem_limit),
    )(x2d, wt, bias2d)


def _channel_stats(x2d, tm, vmem_limit):
    M, C = x2d.shape
    spc = M // (_SPLITS * tm)
    return pl.pallas_call(
        _stats_kernel,
        out_shape=(
            jax.ShapeDtypeStruct((_SPLITS, 1, C), jnp.float32),
            jax.ShapeDtypeStruct((_SPLITS, 1, C), jnp.float32),
        ),
        grid_spec=pltpu.PrefetchScalarGridSpec(
            num_scalar_prefetch=0,
            grid=(_SPLITS, spc),
            in_specs=[pl.BlockSpec((tm, C), lambda c, i: (c * spc + i, 0))],
            out_specs=(
                pl.BlockSpec((1, 1, C), lambda c, i: (c, 0, 0)),
                pl.BlockSpec((1, 1, C), lambda c, i: (c, 0, 0)),
            ),
        ),
        compiler_params=_compiler_params(("parallel", "arbitrary"), vmem_limit),
    )(x2d)


def _bn_apply(y2d, scale, shift, tm, vmem_limit):
    M, C = y2d.shape
    return pl.pallas_call(
        _bn_apply_kernel,
        out_shape=jax.ShapeDtypeStruct((M, C), y2d.dtype),
        grid_spec=pltpu.PrefetchScalarGridSpec(
            num_scalar_prefetch=0,
            grid=(M // tm,),
            in_specs=[
                pl.BlockSpec((tm, C), lambda i: (i, 0)),
                pl.BlockSpec((1, C), lambda i: (0, 0)),
                pl.BlockSpec((1, C), lambda i: (0, 0)),
            ],
            out_specs=pl.BlockSpec((tm, C), lambda i: (i, 0)),
        ),
        compiler_params=_compiler_params(("parallel",), vmem_limit),
        input_output_aliases={0: 0},     # update y in place, no second HBM buffer
    )(y2d, scale, shift)


# ----------------------------- module forward --------------------------------

def graph_conv_1x1(x, weight, bias, *, batch_norm=None,
                   bn_gamma=None, bn_beta=None, eps=1e-5):
    """Forward pass of GraphConv1x1.

    x:       (B, N, C_in)
    weight:  (C_out, C_in)   -- PyTorch nn.Linear convention
    bias:    (C_out,)
    batch_norm: None | 'pre' | 'post'  (training-mode BatchNorm1d; running
                statistics / momentum are not reproduced).
    """
    B, N, c_in = x.shape
    c_out = weight.shape[0]
    M = B * N

    # Lane-dense output: pad C_out to a multiple of 128 (unmasked vst stores);
    # padding columns are zero-weighted and sliced off at the end.
    c_pad = _round_up(c_out, _LANE)
    tn = _pick_tn(c_pad)
    vmem_limit, vmem_budget = _vmem_limits()
    tm_mm, tm_ew = _pick_tiles(M, c_in, c_pad, tn, vmem_budget)

    # Pad rows to a multiple of 2*tm_ew (tm_mm divides tm_ew) so every grid —
    # including the 2-way split stats grids — divides evenly.  Padded rows are
    # zero, which makes their contribution to the batch statistics trivial to
    # remove.
    m_pad = _round_up(M, _SPLITS * tm_ew)
    x2d = x.reshape(M, c_in)
    if m_pad != M:
        x2d = jnp.pad(x2d, ((0, m_pad - M), (0, 0)))

    # f32 master copy of W^T / bias (padded); matmul operands are cast to the
    # model dtype (bf16 inputs keep the MXU bf16 fast path; f32 stays f32).
    w_t = jnp.pad(jnp.asarray(weight, jnp.float32).T, ((0, 0), (0, c_pad - c_out)))
    bias2d = jnp.pad(jnp.asarray(bias, jnp.float32).reshape(1, c_out),
                     ((0, 0), (0, c_pad - c_out)))

    if batch_norm == 'pre':
        gamma = (jnp.ones((1, c_in), jnp.float32) if bn_gamma is None
                 else jnp.asarray(bn_gamma, jnp.float32).reshape(1, c_in))
        beta = (jnp.zeros((1, c_in), jnp.float32) if bn_beta is None
                else jnp.asarray(bn_beta, jnp.float32).reshape(1, c_in))
        ps, pq = _channel_stats(x2d, tm_ew, vmem_limit)   # (2,1,c_in) partials
        sums = jnp.sum(ps, axis=0)                        # padded rows contribute 0
        ssqs = jnp.sum(pq, axis=0)
        mean = sums / M
        var = jnp.maximum(ssqs / M - mean * mean, 0.0)
        scale = gamma * jax.lax.rsqrt(var + eps)          # (1, c_in)
        shift = beta - mean * scale                       # (1, c_in)
        # Fold the affine normalize into the linear:
        #   (x*scale + shift) @ W^T + b == x @ (scale^T * W^T) + (shift @ W^T + b)
        wt_fold = (scale.reshape(c_in, 1) * w_t).astype(x.dtype)
        bias_fold = shift @ w_t + bias2d                  # (1, c_pad) f32
        y2d = _linear(x2d, wt_fold, bias_fold, tm_mm, tn, vmem_limit)

    elif batch_norm == 'post':
        gamma = (jnp.ones((1, c_out), jnp.float32) if bn_gamma is None
                 else jnp.asarray(bn_gamma, jnp.float32).reshape(1, c_out))
        beta = (jnp.zeros((1, c_out), jnp.float32) if bn_beta is None
                else jnp.asarray(bn_beta, jnp.float32).reshape(1, c_out))
        gamma = jnp.pad(gamma, ((0, 0), (0, c_pad - c_out)))
        beta = jnp.pad(beta, ((0, 0), (0, c_pad - c_out)))
        # One fused pass: matmul + per-split channel stats; padded (zero) rows
        # produce exactly the bias row — remove them from the stats here.
        y2d, ps, pq = _linear_stats(x2d, w_t.astype(x.dtype), bias2d,
                                    tm_mm, tn, vmem_limit)
        n_pad_rows = m_pad - M
        sums = jnp.sum(ps, axis=0) - n_pad_rows * bias2d
        ssqs = jnp.sum(pq, axis=0) - n_pad_rows * bias2d * bias2d
        mean = sums / M
        var = jnp.maximum(ssqs / M - mean * mean, 0.0)
        scale = gamma * jax.lax.rsqrt(var + eps)
        shift = beta - mean * scale
        y2d = _bn_apply(y2d, scale, shift, tm_ew, vmem_limit)

    else:
        y2d = _linear(x2d, w_t.astype(x.dtype), bias2d, tm_mm, tn, vmem_limit)

    return y2d[:M, :c_out].reshape(B, N, c_out)


# ----------------------------- reference & test ------------------------------

def _ref_forward(x, weight, bias, batch_norm, eps=1e-5):
    def bn(z):
        zf = z.reshape(-1, z.shape[-1])
        mu = zf.mean(0)
        var = ((zf - mu) ** 2).mean(0)
        return (z - mu) / jnp.sqrt(var + eps)     # gamma=1, beta=0
    if batch_norm == 'pre':
        x = bn(x)
    y = x @ weight.T + bias
    if batch_norm == 'post':
        y = bn(y)
    return y


if __name__ == "__main__":
    configs = [
        dict(B=2, N=64, C_IN=16, C_OUT=32),     # tiny, no padding, single N tile
        dict(B=2, N=72, C_IN=40, C_OUT=272),    # row padding + C_out tiling (3 tiles)
    ]

    key = jax.random.PRNGKey(0)
    ok = True
    for cfg in configs:
        B, N, C_IN, C_OUT = cfg["B"], cfg["N"], cfg["C_IN"], cfg["C_OUT"]
        key, kx, kw, kb = jax.random.split(key, 4)
        x = jax.random.normal(kx, (B, N, C_IN), dtype=jnp.float32)
        # deterministic Linear params (PyTorch-style uniform(-1/sqrt(fan_in), +))
        bound = 1.0 / (C_IN ** 0.5)
        weight = jax.random.uniform(kw, (C_OUT, C_IN), jnp.float32, -bound, bound)
        bias = jax.random.uniform(kb, (C_OUT,), jnp.float32, -bound, bound)

        fwd = jax.jit(graph_conv_1x1, static_argnames=("batch_norm",))
        for mode in (None, 'pre', 'post'):
            y = jax.block_until_ready(fwd(x, weight, bias, batch_norm=mode))
            y_ref = _ref_forward(x, weight, bias, mode)
            if not jnp.allclose(y, y_ref, atol=2e-4, rtol=2e-4):
                ok = False
                err = float(jnp.max(jnp.abs(y - y_ref)))
                print(f"mismatch cfg={cfg} batch_norm={mode}: max abs err {err}")

    if ok:
        print("KERNEL_OK")
</pallas_src>

<mosaic_0001>
module attributes {stable_mosaic.version = 11 : i64} {
  func.func @_linear_kernel(%arg0: i32, %arg1: i32, %arg2: memref<32x16xf32, #tpu.memory_space<vmem>>, %arg3: memref<16x128xf32, #tpu.memory_space<vmem>>, %arg4: memref<1x128xf32, #tpu.memory_space<vmem>>, %arg5: memref<32x128xf32, #tpu.memory_space<vmem>>) attributes {dimension_semantics = [#tpu.dimension_semantics<parallel>, #tpu.dimension_semantics<parallel>], iteration_bounds = array<i64: 4, 1>, scalar_prefetch = 0 : i64, scratch_operands = 0 : i64, tpu.core_type = #tpu.core_type<tc>, window_params = [{transform_indices = @transform_0, window_bounds = array<i64: 32, 16>}, {transform_indices = @transform_1, window_bounds = array<i64: 16, 128>}, {transform_indices = @transform_2, window_bounds = array<i64: 1, 128>}, {transform_indices = @transform_3, window_bounds = array<i64: 32, 128>}]} {
    %c0 = arith.constant 0 : index
    %c0_0 = arith.constant 0 : index
    %0 = vector.load %arg2[%c0, %c0_0] : memref<32x16xf32, #tpu.memory_space<vmem>>, vector<32x16xf32>
    %c0_1 = arith.constant 0 : index
    %c0_2 = arith.constant 0 : index
    %1 = vector.load %arg3[%c0_1, %c0_2] : memref<16x128xf32, #tpu.memory_space<vmem>>, vector<16x128xf32>
    %cst = arith.constant dense<0.000000e+00> : vector<32x128xf32>
    %2 = tpu.matmul %0, %1, %cst {dimension_numbers = #tpu.dot_dimension_numbers<[1], [0], [0], [1], [0, 0, 1, 1], [], []>} : vector<32x16xf32>, vector<16x128xf32>, vector<32x128xf32> -> vector<32x128xf32>
    %c0_3 = arith.constant 0 : index
    %c0_4 = arith.constant 0 : index
    %3 = vector.load %arg4[%c0_3, %c0_4] : memref<1x128xf32, #tpu.memory_space<vmem>>, vector<1x128xf32>
    %4 = vector.broadcast %3 : vector<1x128xf32> to vector<32x128xf32>
    %5 = arith.addf %2, %4 : vector<32x128xf32>
    %c0_5 = arith.constant 0 : index
    %c0_6 = arith.constant 0 : index
    %6 = vector.load %arg5[%c0_5, %c0_6] : memref<32x128xf32, #tpu.memory_space<vmem>>, vector<32x128xf32>
    tpu.vector_store %arg5[%c0_5, %c0_6], %5 {strides = array<i32>} : memref<32x128xf32, #tpu.memory_space<vmem>>, vector<32x128xf32>,
    return
  }
  func.func @transform_0(%arg0: i32, %arg1: i32) -> (i32, i32) {
    %c0_i32 = arith.constant 0 : i32
    %c0_i32_0 = arith.constant 0 : i32
    return %arg0, %c0_i32 : i32, i32
  }
  func.func @transform_1(%arg0: i32, %arg1: i32) -> (i32, i32) {
    %c0_i32 = arith.constant 0 : i32
    %c0_i32_0 = arith.constant 0 : i32
    return %c0_i32, %arg1 : i32, i32
  }
  func.func @transform_2(%arg0: i32, %arg1: i32) -> (i32, i32) {
    %c0_i32 = arith.constant 0 : i32
    %c0_i32_0 = arith.constant 0 : i32
    return %c0_i32, %arg1 : i32, i32
  }
  func.func @transform_3(%arg0: i32, %arg1: i32) -> (i32, i32) {
    %c0_i32 = arith.constant 0 : i32
    return %arg0, %arg1 : i32, i32
  }
}

</mosaic_0001>

<bundles_post_ra>
// kernel: graph_conv_1x1.1
= control target key start
LH: loop header
LB: loop body
LE: loop exit
PB: predicated region body
PF: predicated region fallthrough
CT: control target
= control target key end

     0   :  { %s475_s12 = smov 0   ;;  %s477_s13 = smov 0   ;;  %s517_s0 = inlined_call_operand.vmem [shape: f32[128,16], index: 0, kind: input, shape index: {}]   ;;  %s518_s1 = inlined_call_operand.vmem [shape: f32[16,128], index: 1, kind: input, shape index: {}]   ;;  %s519_s2 = inlined_call_operand.vmem [shape: f32[1,128], index: 2, kind: input, shape index: {}]   ;;  %s520_s3 = inlined_call_operand.vmem [shape: f32[128,128], index: 3, kind: output, shape index: {}]  }
   0x1   :  { %s479_s14 = smov 0  }
   0x2 LB: > { %s25_s15 = sadd.s32 1, %s449_s13  ;;  %p389_p0 = scmp.ge.s32.totalorder %s453_s14, 1  ;;  %s453_s14 = sphi %s479_s14, %s13_s14   ;;  %s449_s13 = sphi %s477_s13, %s522_s13   ;;  %s445_s12 = sphi %s475_s12, %s521_s12  }
   0x3   : > { %p27_p1 = scmp.ge.s32.totalorder %s25_s15, 4  ;;  %p169_p2 = scmp.lt.s32.totalorder %s453_s14, 5 }
   0x5   : > { %s524_s15 = smov (%p27_p1, %s25_s15), 0  ;;  %p170_p3 = pnand %p389_p0, %p169_p2 }
   0x6   : > { %s390_s20 = sshll.u32 (!%p170_p3), %s445_s12, 2 }
   0x7   : > { %173 = sbr.rel (%p170_p3) target bundleno = 153 (0x99), region = 32  ;;  %p204_p4 = scmp.lt.s32.totalorder (!%p170_p3), %s390_s20, 15 }
   0xc   : > { %v230_v0 = vld [vmem:[%s518_s1 + $0x8] sm:$0xff]  ;;  %v229_v1 = vld [vmem:[%s518_s1] sm:$0xff]  ;;  %s526_s20 = smov (!%p204_p4, %s390_s20), 15  ;;  %vm235_vm0 = vcmask 130048  }
   0xd   : > { %401 = vmatpush.msra.mxu2 %v230_v0  ;;  %402 = vmatpush.msra.mxu3 %v230_v0  ;;  %s391_s21 = sshll.u32 %s526_s20, 3  ;;  %v430_v6 = vld [vmem:[%s519_s2] ss:$0 sm:$0xff] }
   0xe   : > { %262 = vmatpush.msra.mxu0 %v230_v0  ;;  %400 = vmatpush.msra.mxu1 %v230_v0  ;;  %s207_s24 = scalar_lea.vmem %s517_s0, %s391_s21  ;;  %s223_s29 = scalar_lea.vmem %s520_s3, %s391_s21 }
   0xf   : > { %404 = vmatpush.msra.mxu2 %v229_v1  ;;  %405 = vmatpush.msra.mxu3 %v229_v1  ;;  %v227_v2 = vld [vmem:[%s207_s24 + $0x10] sm:$0xff]  ;;  %v228_v3 = vld [vmem:[%s207_s24 + $0x18] sm:$0xff]  ;;  %v225_v4 = vld [vmem:[%s207_s24] sm:$0xff] }
  0x10   : > { %263 = vmatpush.msra.mxu0 %v229_v1  ;;  %403 = vmatpush.msra.mxu1 %v229_v1  ;;  %v226_v5 = vld [vmem:[%s207_s24 + $0x8] sm:$0xff] }
  0x11   : > { %396 = vmatmul.msk.f32.vlgmr.msra.gmra.mxu2 %vm235_vm0, %v227_v2  ;;  %397 = vmatmul.msk.f32.vlgmr.msra.gmra.mxu3 %vm235_vm0, %v228_v3 }
  0x12   : > { %394 = vmatmul.msk.f32.vlgmr.msra.gmra.mxu0 %vm235_vm0, %v225_v4  ;;  %395 = vmatmul.msk.f32.vlgmr.msra.gmra.mxu1 %vm235_vm0, %v226_v5 }
  0x8f   : > { %v265_v7 = vpop.f32.mrf.mxu0  ;;  %v268_v8 = vpop.f32.mrf.mxu1 }
  0x90   : > { %v266_v9 = vadd.f32 %v430_v6, %v265_v7  ;;  %v269_v10 = vadd.f32 %v430_v6, %v268_v8 }
  0x92   : > { %277 = vst [vmem:[%s223_s29] sm:$0xff] %v266_v9 }
  0x93   : > { %278 = vst [vmem:[%s223_s29 + $0x8] sm:$0xff] %v269_v10 }
  0x94   : > { %v271_v11 = vpop.f32.mrf.mxu2  ;;  %v274_v12 = vpop.f32.mrf.mxu3 }
  0x95   : > { %v272_v13 = vadd.f32 %v430_v6, %v271_v11  ;;  %v275_v14 = vadd.f32 %v430_v6, %v274_v12 }
  0x97   : > { %279 = vst [vmem:[%s223_s29 + $0x10] sm:$0xff] %v272_v13 }
  0x98   : > { %280 = vst [vmem:[%s223_s29 + $0x18] sm:$0xff] %v275_v14 }
  0x99 PF: > { %s13_s14 = sadd.s32 1, %s453_s14   ;;  %s521_s12 = smov %s449_s13 }
  0x9a   : > { %p10_p5 = scmp.ge.s32.totalorder %s13_s14, 6   ;;  %s522_s13 = smov %s524_s15 }
  0x9c   :  { %12 = sbr.rel (!%p10_p5) target bundleno = 2 (0x2), region = 68 }

</bundles_post_ra>
